<compile_context>
chip_gen: v5e
topology: v5e:2x2
jax: 0.10.0
libtpu: 0.0.40
codegen_flags: <defaults>
</compile_context>

<pallas_src>
import functools
import math

import jax
import jax.numpy as jnp
from jax.experimental import pallas as pl
from jax.experimental.pallas import tpu as pltpu


_LANE = 128


def _layernorm_kernel(x_ref, wb_ref, o_ref, *, eps, inv_h):
    # x_ref: (row_tile, Hp).  wb_ref: (2, Hp), row 0 = weight, row 1 = bias,
    # already cast to the epilogue dtype in the wrapper.
    x = x_ref[...].astype(jnp.float32)

    # Two independent lane reductions; var = E[x^2] - mean^2 (single pass with
    # f32 accumulation -- fine for LN-scale activations).
    # TODO(synk): switch to the two-pass E[(x-mean)^2] form if inputs can carry
    # a large DC offset (catastrophic-cancellation risk in f32).
    sum_x = jnp.sum(x, axis=-1, keepdims=True)
    sum_x2 = jnp.sum(x * x, axis=-1, keepdims=True)
    mean = sum_x * inv_h
    var = jnp.maximum(sum_x2 * inv_h - mean * mean, 0.0)
    inv = jax.lax.rsqrt(var + eps)            # EUP rsqrt (free slot)

    wb = wb_ref[...]
    y = ((x - mean) * inv).astype(wb.dtype)   # epilogue dtype: f32 or bf16
    o_ref[...] = (wb[0:1, :] * y + wb[1:2, :]).astype(o_ref.dtype)


def _tpu_chip_info():
    """Best-effort (generation, vmem_capacity_bytes); never raises."""
    vmem_bytes = None
    try:
        vmem_bytes = int(pltpu.get_tpu_info().vmem_capacity_bytes)
    except Exception:
        vmem_bytes = None
    kind = ""
    try:
        kind = (jax.devices()[0].device_kind or "").lower()
    except Exception:
        kind = ""
    gen = None
    for g, tags in ((7, ("v7", "7x")), (6, ("v6", "6e", "6p")),
                    (5, ("v5", "5e", "5p", "lite")), (4, ("v4",))):
        if any(t in kind for t in tags):
            gen = g
            break
    if vmem_bytes is None:
        vmem_bytes = 64 * 1024 * 1024        # conservative: v7x-sized VMEM
    return gen, vmem_bytes


def bert_layer_norm(x, weight, bias, eps=1e-12, row_tile=None):
    """x: (..., H); weight, bias: (H,). Returns same shape/dtype as x."""
    orig_shape = x.shape
    hidden = orig_shape[-1]
    rows = math.prod(orig_shape[:-1]) if len(orig_shape) > 1 else 1

    gen, vmem_capacity = _tpu_chip_info()

    # bf16 epilogue only where the VPU has bf16 (v6e / v7x) and I/O is bf16.
    use_bf16_epilogue = (x.dtype == jnp.bfloat16) and (gen is not None and gen >= 6)
    affine_dtype = jnp.bfloat16 if use_bf16_epilogue else jnp.float32

    x2 = x.reshape(rows, hidden)
    wb = jnp.concatenate(
        [weight.reshape(1, hidden), bias.reshape(1, hidden)], axis=0
    ).astype(affine_dtype)

    # Lane-dense layout: pad hidden to a multiple of 128 (zeros don't perturb
    # the sums; statistics divide by the true hidden size below).
    padded_hidden = pl.cdiv(hidden, _LANE) * _LANE
    if padded_hidden != hidden:
        pad = padded_hidden - hidden
        x2 = jnp.pad(x2, ((0, 0), (0, pad)))
        wb = jnp.pad(wb, ((0, 0), (0, pad)))

    itemsize = jnp.dtype(x.dtype).itemsize
    # Sublane packing: 8 rows/vreg at 32-bit, 16 at bf16, 32 at 8-bit.
    sublane = 8 * max(1, 4 // itemsize)

    # Generation-aware tile / scoped-VMEM budgets.
    if vmem_capacity >= 96 * 1024 * 1024:    # v5e / v6e: 128 MiB physical VMEM
        tile_budget_bytes = 8 * 1024 * 1024
        row_cap = 2048
        vmem_limit_cap = 96 * 1024 * 1024
    else:                                    # v7x (64 MiB per TC) / unknown
        tile_budget_bytes = 2 * 1024 * 1024
        row_cap = 1024
        vmem_limit_cap = 48 * 1024 * 1024

    if row_tile is None:
        row_tile = tile_budget_bytes // max(padded_hidden * itemsize, 1)
        row_tile = max(sublane, min(row_cap, row_tile))

    # Keep >= ~4 grid steps (>= 2x the v7x TC count) when rows allow it, so the
    # pipeline double-buffers and both TensorCores get work.
    min_steps = 4
    if rows >= min_steps * sublane:
        row_tile = min(row_tile,
                       max(sublane, (rows // min_steps // sublane) * sublane))

    # Round to a sublane multiple; never larger than the sublane-multiple cover
    # of `rows` (small inputs collapse to a single block; ragged last block is
    # masked by Pallas and is safe for a strictly row-wise op).
    row_tile = max(sublane, (row_tile // sublane) * sublane)
    row_tile = min(row_tile, pl.cdiv(rows, sublane) * sublane)

    grid = (pl.cdiv(rows, row_tile),)

    # Scoped-VMEM estimate: double-buffered in + out tiles, ~4 f32 tile-sized
    # temporaries (x_f32, x*x, y, store staging), constants; 2x headroom.
    tile_bytes = row_tile * padded_hidden * itemsize
    f32_tile_bytes = row_tile * padded_hidden * 4
    est = 2 * 2 * tile_bytes + 4 * f32_tile_bytes + 2 * 2 * padded_hidden * 4
    vmem_limit = int(min(max(2 * est, 8 * 1024 * 1024), vmem_limit_cap))

    kernel = functools.partial(_layernorm_kernel, eps=eps,
                               inv_h=1.0 / float(hidden))

    out = pl.pallas_call(
        kernel,
        out_shape=jax.ShapeDtypeStruct((rows, padded_hidden), x.dtype),
        grid_spec=pltpu.PrefetchScalarGridSpec(
            num_scalar_prefetch=0,
            grid=grid,
            in_specs=[
                pl.BlockSpec((row_tile, padded_hidden), lambda i: (i, 0)),
                pl.BlockSpec((2, padded_hidden), lambda i: (0, 0)),
            ],
            out_specs=pl.BlockSpec((row_tile, padded_hidden), lambda i: (i, 0)),
        ),
        compiler_params=pltpu.CompilerParams(
            dimension_semantics=("parallel",),   # shard row tiles across v7x's 2 TCs
            vmem_limit_bytes=vmem_limit,
        ),
    )(x2, wb)

    if padded_hidden != hidden:
        out = out[:, :hidden]
    return out.reshape(orig_shape)


def _reference(x, weight, bias, eps=1e-12):
    x32 = x.astype(jnp.float32)
    u = jnp.mean(x32, axis=-1, keepdims=True)
    s = jnp.mean((x32 - u) ** 2, axis=-1, keepdims=True)
    y = (x32 - u) / jnp.sqrt(s + eps)
    return (weight.astype(jnp.float32) * y + bias.astype(jnp.float32)).astype(x.dtype)


if __name__ == "__main__":
    key = jax.random.PRNGKey(0)
    k_x, k_w, k_b, k_x2, k_x3 = jax.random.split(key, 5)

    # Case 1: module-default params (ones / zeros), (2, 8, 32) f32.
    batch, seq, hidden = 2, 8, 32
    x = jax.random.normal(k_x, (batch, seq, hidden), dtype=jnp.float32)
    weight = jnp.ones((hidden,), dtype=jnp.float32)
    bias = jnp.zeros((hidden,), dtype=jnp.float32)

    out = jax.block_until_ready(bert_layer_norm(x, weight, bias))
    ref = _reference(x, weight, bias)
    assert out.shape == x.shape and out.dtype == x.dtype
    assert jnp.allclose(out, ref, atol=1e-5, rtol=1e-5), "mismatch vs reference (case 1)"

    # Case 2: non-trivial affine params, row count not a multiple of the tile
    # (ragged last block) and hidden not a multiple of 128 (lane-padding path).
    x2 = jax.random.normal(k_x2, (3, 5, hidden), dtype=jnp.float32) * 2.0 + 0.5
    w2 = jax.random.normal(k_w, (hidden,), dtype=jnp.float32)
    b2 = jax.random.normal(k_b, (hidden,), dtype=jnp.float32)

    out2 = jax.block_until_ready(bert_layer_norm(x2, w2, b2))
    ref2 = _reference(x2, w2, b2)
    assert out2.shape == x2.shape
    assert jnp.allclose(out2, ref2, atol=1e-5, rtol=1e-5), "mismatch vs reference (case 2)"

    # Case 3: bf16 input (exercises the bf16 epilogue on v6e/v7x; f32 epilogue
    # elsewhere). Output dtype is bf16 either way -> looser tolerance.
    hidden3 = 256
    x3 = jax.random.normal(k_x3, (6, 8, hidden3), dtype=jnp.float32).astype(jnp.bfloat16)
    w3 = jnp.ones((hidden3,), dtype=jnp.float32)
    b3 = jnp.zeros((hidden3,), dtype=jnp.float32)

    out3 = jax.block_until_ready(bert_layer_norm(x3, w3, b3))
    ref3 = _reference(x3, w3, b3)
    assert out3.dtype == jnp.bfloat16 and out3.shape == x3.shape
    assert jnp.allclose(out3.astype(jnp.float32), ref3.astype(jnp.float32),
                        atol=5e-2, rtol=5e-2), "mismatch vs reference (case 3)"

    print("KERNEL_OK")
</pallas_src>

<mosaic_0001>
module attributes {stable_mosaic.version = 11 : i64} {
  func.func @_layernorm_kernel(%arg0: i32, %arg1: memref<16x128xf32, #tpu.memory_space<vmem>>, %arg2: memref<2x128xf32, #tpu.memory_space<vmem>>, %arg3: memref<16x128xf32, #tpu.memory_space<vmem>>) attributes {dimension_semantics = [#tpu.dimension_semantics<parallel>], iteration_bounds = array<i64: 1>, scalar_prefetch = 0 : i64, scratch_operands = 0 : i64, tpu.core_type = #tpu.core_type<tc>, window_params = [{transform_indices = @transform_0, window_bounds = array<i64: 16, 128>}, {pipeline_mode = #tpu.pipeline_mode<synchronous>, transform_indices = @transform_1, window_bounds = array<i64: 2, 128>}, {transform_indices = @transform_2, window_bounds = array<i64: 16, 128>}]} {
    %c0 = arith.constant 0 : index
    %c0_0 = arith.constant 0 : index
    %0 = vector.load %arg1[%c0, %c0_0] : memref<16x128xf32, #tpu.memory_space<vmem>>, vector<16x128xf32>
    %cst = arith.constant dense<0.000000e+00> : vector<16xf32>
    %1 = vector.multi_reduction <add>, %0, %cst [1] : vector<16x128xf32> to vector<16xf32>
    %2 = vector.shape_cast %1 : vector<16xf32> to vector<16x1xf32>
    %3 = arith.mulf %0, %0 : vector<16x128xf32>
    %cst_1 = arith.constant dense<0.000000e+00> : vector<16xf32>
    %4 = vector.multi_reduction <add>, %3, %cst_1 [1] : vector<16x128xf32> to vector<16xf32>
    %5 = vector.shape_cast %4 : vector<16xf32> to vector<16x1xf32>
    %cst_2 = arith.constant 3.125000e-02 : f32
    %6 = vector.broadcast %cst_2 : f32 to vector<16x1xf32>
    %7 = arith.mulf %2, %6 : vector<16x1xf32>
    %cst_3 = arith.constant 3.125000e-02 : f32
    %8 = vector.broadcast %cst_3 : f32 to vector<16x1xf32>
    %9 = arith.mulf %5, %8 : vector<16x1xf32>
    %10 = arith.mulf %7, %7 : vector<16x1xf32>
    %11 = arith.subf %9, %10 : vector<16x1xf32>
    %cst_4 = arith.constant 0.000000e+00 : f32
    %12 = vector.broadcast %cst_4 : f32 to vector<16x1xf32>
    %13 = arith.maximumf %11, %12 : vector<16x1xf32>
    %cst_5 = arith.constant 9.99999996E-13 : f32
    %14 = vector.broadcast %cst_5 : f32 to vector<16x1xf32>
    %15 = arith.addf %13, %14 : vector<16x1xf32>
    %16 = math.rsqrt %15 : vector<16x1xf32>
    %c0_6 = arith.constant 0 : index
    %c0_7 = arith.constant 0 : index
    %17 = vector.load %arg2[%c0_6, %c0_7] : memref<2x128xf32, #tpu.memory_space<vmem>>, vector<2x128xf32>
    %18 = vector.broadcast %7 : vector<16x1xf32> to vector<16x128xf32>
    %19 = arith.subf %0, %18 : vector<16x128xf32>
    %20 = vector.broadcast %16 : vector<16x1xf32> to vector<16x128xf32>
    %21 = arith.mulf %19, %20 : vector<16x128xf32>
    %22 = vector.extract_strided_slice %17 {offsets = [0, 0], sizes = [1, 128], strides = [1, 1]} : vector<2x128xf32> to vector<1x128xf32>
    %23 = vector.broadcast %22 : vector<1x128xf32> to vector<16x128xf32>
    %24 = arith.mulf %23, %21 : vector<16x128xf32>
    %25 = vector.extract_strided_slice %17 {offsets = [1, 0], sizes = [1, 128], strides = [1, 1]} : vector<2x128xf32> to vector<1x128xf32>
    %26 = vector.broadcast %25 : vector<1x128xf32> to vector<16x128xf32>
    %27 = arith.addf %24, %26 : vector<16x128xf32>
    %c0_8 = arith.constant 0 : index
    %c0_9 = arith.constant 0 : index
    %28 = vector.load %arg3[%c0_8, %c0_9] : memref<16x128xf32, #tpu.memory_space<vmem>>, vector<16x128xf32>
    tpu.vector_store %arg3[%c0_8, %c0_9], %27 {strides = array<i32>} : memref<16x128xf32, #tpu.memory_space<vmem>>, vector<16x128xf32>,
    return
  }
  func.func @transform_0(%arg0: i32) -> (i32, i32) {
    %c0_i32 = arith.constant 0 : i32
    %c0_i32_0 = arith.constant 0 : i32
    return %arg0, %c0_i32 : i32, i32
  }
  func.func @transform_1(%arg0: i32) -> (i32, i32) {
    %c0_i32 = arith.constant 0 : i32
    %c0_i32_0 = arith.constant 0 : i32
    %c0_i32_1 = arith.constant 0 : i32
    return %c0_i32, %c0_i32_0 : i32, i32
  }
  func.func @transform_2(%arg0: i32) -> (i32, i32) {
    %c0_i32 = arith.constant 0 : i32
    %c0_i32_0 = arith.constant 0 : i32
    return %arg0, %c0_i32 : i32, i32
  }
}

</mosaic_0001>

<bundles_post_ra>
// kernel: tpu_custom_call.1
= control target key start
LH: loop header
LB: loop body
LE: loop exit
PB: predicated region body
PF: predicated region fallthrough
CT: control target
= control target key end

     0   :  { %7 = vsyncpa [#allocation3], 0  ;;  %s241_s0 = inlined_call_operand.hbm [shape: f32[16,128], index: 0, kind: input, shape index: {}]   ;;  %s242_s1 = inlined_call_operand.hbm [shape: f32[2,128], index: 1, kind: input, shape index: {}]   ;;  %s243_s2 = inlined_call_operand.hbm [shape: f32[16,128], index: 2, kind: output, shape index: {}]  }
   0x1   :  { %8 = vsyncpa [#allocation6], 0 }
   0x2   :  { %9 = vsyncpa [#allocation4], 0  ;;  %s14_s11 = sshll.u32 %s241_s0, 4  ;;  %s206_s12 = smov [#allocation2]   ;;  %s15_s11 = int_to_ptr.hbm [resolvable:$true] %s14_s11 }
   0x3   :  { %s16_s13 = sshll.u32 %s206_s12, 4  ;;  %s28_s16 = sshll.u32 %s242_s1, 4  ;;  %s17_s13 = int_to_ptr.vmem [resolvable:$true] %s16_s13  ;;  %s29_s16 = int_to_ptr.hbm [resolvable:$true] %s28_s16 }
   0x4   :  { %s207_s17 = smov 128   ;;  %s208_s18 = smov 8  }
   0x5   :  { %22 = dma.hbm_to_vmem [thread:$0]  %s15_s11, 256, %s17_s13, [#allocation3], %s207_s17, %s207_s17, %s208_s18  }
   0x6   :  { %s209_s19 = smov [#allocation5]  }
   0x7   :  { %s30_s20 = sshll.u32 %s209_s19, 4  ;;  %s31_s20 = int_to_ptr.vmem [resolvable:$true] %s30_s20 }
   0x8   :  { %33 = dma.hbm_to_vmem [thread:$0]  %s29_s16, 32, %s31_s20, [#allocation6]  }
   0x9   :  { %200 = dma.done.wait [#allocation3], 256  }
   0xa   :  { %201 = vsyncadd [#allocation3], 4294967040 }
   0xb   :  { %202 = dma.done.wait [#allocation6], 32  }
   0xc   :  { %203 = vsyncadd [#allocation6], 4294967264  ;;  %v42_v0 = vld [vmem:[#allocation2] sm:$0xff]  ;;  %v43_v2 = vld [vmem:[#allocation2 + $0x8] sm:$0xff]  ;;  %s210_s0 = smov [#allocation7]   ;;  %s105_s23 = sshll.u32 %s243_s2, 4  ;;  %s106_s23 = int_to_ptr.hbm [resolvable:$true] %s105_s23 }
   0xd   :  { %44 = vadd.xlane.f32.xlu0 %v42_v0  ;;  %v48_v1 = vmul.f32 %v42_v0, %v42_v0  ;;  %v49_v3 = vmul.f32 %v43_v2, %v43_v2  ;;  %v86_v25 = vld [vmem:[#allocation5] sm:$0x3]  ;;  %s103_s1 = sshll.u32 %s210_s0, 4  ;;  %s104_s1 = int_to_ptr.vmem [resolvable:$true] %s103_s1 }
   0xe   :  { %v91_v30 = vperm.slane %v86_v25, 0  ;;  %v94_v34 = vperm.slane %v86_v25, 1 }
   0xf   :  { %50 = vadd.xlane.f32.xlu1 %v48_v1 }
  0x15   :  { %46 = vadd.xlane.f32.xlu0 %v43_v2 }
  0x17   :  { %52 = vadd.xlane.f32.xlu1 %v49_v3 }
  0x80   :  { %v45_v4 = vpop.xlane.xlu0 %44 }
  0x81   :  { %v54_v5 = vmul.f32 0.03125, %v45_v4 }
  0x82   :  { %v51_v6 = vpop.xlane.xlu1 %50 }
  0x83   :  { %v58_v7 = vmul.f32 %v54_v5, %v54_v5  ;;  %v56_v8 = vmul.f32 0.03125, %v51_v6  ;;  %v87_v28 = vsub.f32 %v42_v0, %v54_v5 }
  0x85   :  { %v60_v9 = vsub.f32 %v56_v8, %v58_v7 }
  0x87   :  { %v62_v10 = vmax.f32 %v60_v9, 0.0 }
  0x88   :  { %v47_v11 = vpop.xlane.xlu0 %46 }
  0x89   :  { %v64_v12 = vadd.f32 1e-12, %v62_v10  ;;  %v55_v13 = vmul.f32 0.03125, %v47_v11 }
  0x8a   :  { %v53_v14 = vpop.xlane.xlu1 %52 }
  0x8b   :  { %124 = vrsqrt.f32 %v64_v12  ;;  %v59_v15 = vmul.f32 %v55_v13, %v55_v13  ;;  %v57_v16 = vmul.f32 0.03125, %v53_v14  ;;  %vm72_vm1 = vweird.f32 %v64_v12 }
  0x8c   :  { %v88_v40 = vsub.f32 %v43_v2, %v55_v13 }
  0x8d   :  { %v61_v17 = vsub.f32 %v57_v16, %v59_v15 }
  0x8f   :  { %v63_v18 = vmax.f32 %v61_v17, 0.0 }
  0x91   :  { %v125_v19 = vpop.eup %124  ;;  %v65_v21 = vadd.f32 1e-12, %v63_v18 }
  0x92   :  { %v67_v20 = vmul.f32 %v125_v19, %v64_v12  ;;  %vm73_vm0 = vweird.f32 %v125_v19 }
  0x93   :  { %126 = vrsqrt.f32 %v65_v21  ;;  %vm74_vm2 = vmor %vm72_vm1, %vm73_vm0  ;;  %vm82_vm4 = vweird.f32 %v65_v21 }
  0x94   :  { %v68_v22 = vmul.f32 %v125_v19, %v67_v20 }
  0x96   :  { %v69_v23 = vmul.f32 0.5, %v68_v22 }
  0x98   :  { %v70_v24 = vsub.f32 1.5, %v69_v23 }
  0x99   :  { %v127_v26 = vpop.eup %126 }
  0x9a   :  { %v71_v27 = vmul.f32 %v125_v19, %v70_v24  ;;  %v77_v29 = vmul.f32 %v127_v26, %v65_v21  ;;  %vm83_vm3 = vweird.f32 %v127_v26 }
  0x9b   :  { %vm84_vm5 = vmor %vm82_vm4, %vm83_vm3 }
  0x9c   :  { %v75_v31 = vsel %vm74_vm2, %v125_v19, %v71_v27  ;;  %v78_v32 = vmul.f32 %v127_v26, %v77_v29 }
  0x9d   :  { %v89_v33 = vmul.f32 %v87_v28, %v75_v31 }
  0x9e   :  { %v79_v35 = vmul.f32 0.5, %v78_v32 }
  0x9f   :  { %v92_v36 = vmul.f32 %v91_v30, %v89_v33 }
  0xa0   :  { %v80_v37 = vsub.f32 1.5, %v79_v35 }
  0xa1   :  { %v95_v38 = vadd.f32 %v94_v34, %v92_v36 }
  0xa2   :  { %v81_v39 = vmul.f32 %v127_v26, %v80_v37 }
  0xa3   :  { %97 = vst [vmem:[#allocation7] sm:$0xff] %v95_v38 }
  0xa4   :  { %v85_v41 = vsel %vm84_vm5, %v127_v26, %v81_v39 }
  0xa5   :  { %v90_v42 = vmul.f32 %v88_v40, %v85_v41 }
  0xa7   :  { %v93_v43 = vmul.f32 %v91_v30, %v90_v42 }
  0xa9   :  { %v96_v44 = vadd.f32 %v94_v34, %v93_v43 }
  0xab   :  { %98 = vst [vmem:[#allocation7 + $0x8] sm:$0xff] %v96_v44 }
  0xac   :  { %111 = dma.vmem_to_hbm [thread:$0]  %s104_s1, 256, %s106_s23, [#allocation4], %s207_s17, %s207_s17, %s208_s18  }
  0xad   :  { %204 = dma.done.wait [#allocation4], 256  }
  0xae   :  { %205 = vsyncadd [#allocation4], 4294967040 }
  0xaf   :  { %116 = vsyncpa [#allocation3], 1 }
  0xb0   :  { %117 = vsyncpa [#allocation6], 1 }
  0xb1   :  { %118 = vsyncpa [#allocation4], 1 }

</bundles_post_ra>
